<compile_context>
chip_gen: v7x
topology: tpu7x:2x2x1
jax: 0.10.0
libtpu: 0.0.40
codegen_flags: <defaults>
</compile_context>

<pallas_src>
import math

import jax
import jax.numpy as jnp
from jax import lax
from jax.experimental import pallas as pl
from jax.experimental.pallas import tpu as pltpu


# ---------------------------------------------------------------------------
# Fused Pallas kernel: the whole TemporalBlock per grid step
# ---------------------------------------------------------------------------
def _build_fused_kernel(layer_metas, has_downsample, b_tile, L):
    """layer_metas: tuple of (K, dilation) per ConvTemporalSubBlock (static)."""
    n_layers = len(layer_metas)
    T = b_tile * L                                    # merged batch*time lanes

    def kernel(*refs):
        x_ref = refs[0]                               # (b_tile, Cin0, L) f32
        layer_refs = refs[1:1 + 2 * n_layers]         # (w2, b) per layer
        pos = 1 + 2 * n_layers
        if has_downsample:
            wd_ref, bd_ref = refs[pos], refs[pos + 1]
            pos += 2
        o_ref = refs[pos]                             # (b_tile, Cout_last, L)

        # ---- Load the batch tile ONCE; merge batch into the lane axis ------
        if b_tile == 1:
            x0 = x_ref[0]                             # (Cin0, L) f32 (free squeeze)
        else:
            # One relayout per grid step, amortised over the whole block.
            x0 = jnp.transpose(x_ref[...], (1, 0, 2)).reshape(x_ref.shape[1], T)

        # Hoisted per-segment time index, shared by every layer / tap.
        t_idx = lax.broadcasted_iota(jnp.int32, (1, T), 1)
        if b_tile > 1:
            t_idx = t_idx % L                         # position inside each segment

        act = x0                                      # f32 activation, (Cin, T)
        y = None
        for li, (K, dil) in enumerate(layer_metas):
            w_ref = layer_refs[2 * li]                # (Cout, K*Cin) bf16
            b_ref = layer_refs[2 * li + 1]            # (Cout, 1)     f32
            # Build the K causally-shifted taps and stack them along sublanes,
            # so the whole layer is ONE matmul with contraction dim K*Cin.
            taps = []
            for k in range(K):                        # K tiny & static: unrolled
                s = (K - 1 - k) * dil                 # causal shift of tap k
                if s == 0:
                    taps.append(act)
                else:
                    # out[t] needs act[t - s]: lane-rotate toward higher t (XLU),
                    # then zero in-segment positions < s (in-kernel causal pad;
                    # the mod-L index also stops rolls leaking across batch
                    # segments when b_tile > 1).
                    rolled = pltpu.roll(act, shift=s, axis=1)
                    taps.append(jnp.where(t_idx >= s, rolled, 0.0))
            stacked = jnp.concatenate(taps, axis=0) if K > 1 else taps[0]
            # Single f32->bf16 cast right before the MXU; bias + ReLU in f32.
            y = jnp.dot(w_ref[...], stacked.astype(jnp.bfloat16),
                        preferred_element_type=jnp.float32)
            y = jnp.maximum(y + b_ref[...], 0.0)
            act = y                                   # next layer shifts the f32 y

        # ---- Residual on the ORIGINAL block input, then final ReLU ---------
        if has_downsample:
            res = jnp.dot(wd_ref[...], x0.astype(jnp.bfloat16),
                          preferred_element_type=jnp.float32) + bd_ref[...]
        else:
            res = x0                                  # exact f32 residual
        out = jnp.maximum(y + res, 0.0)               # (Cout_last, T) f32

        if b_tile == 1:
            o_ref[0] = out.astype(o_ref.dtype)
        else:
            o_ref[...] = jnp.transpose(
                out.reshape(o_ref.shape[1], b_tile, L), (1, 0, 2)
            ).astype(o_ref.dtype)

    return kernel


# ---------------------------------------------------------------------------
# Wrapper
# ---------------------------------------------------------------------------
def temporal_block_forward(x_ncl, params, *, b_tile=None, out_dtype=jnp.bfloat16):
    """Fused TemporalBlock forward.

    x_ncl: (N, Cin0, L) in PyTorch NCL layout (f32); returns (N, Cout_last, L)
    in `out_dtype` (bf16 by default to halve HBM writeback).  Grid is over
    batch tiles only, marked "parallel".  Default b_tile = max(1, N // 2)
    keeps at least two grid steps (both v7x TensorCores busy) while
    amortising per-step overhead.
    """
    N, Cin0, L = x_ncl.shape
    if b_tile is None:
        b_tile = max(1, N // 2)
    assert N % b_tile == 0, "b_tile must divide the batch"

    layers = params["sub_blocks"]
    layer_metas = tuple((int(l["w"].shape[2]), int(l["dilation"])) for l in layers)
    has_ds = "wd" in params
    Cout_last = int(layers[-1]["w"].shape[0])

    # x stays in its caller dtype/layout: the bf16 cast happens in-kernel.
    operands = [x_ncl]
    in_specs = [pl.BlockSpec((b_tile, Cin0, L), lambda n: (n, 0, 0))]
    for l in layers:
        w = l["w"]                                    # PyTorch layout (Cout, Cin, K)
        Cout, Cin, K = (int(d) for d in w.shape)
        # Fold the K taps into the contraction dim: w2[o, k*Cin + c] = w[o, c, k].
        # Done once in the wrapper on a tiny tensor (free).
        w2 = jnp.transpose(w, (0, 2, 1)).reshape(Cout, K * Cin).astype(jnp.bfloat16)
        operands += [w2, l["b"].reshape(Cout, 1).astype(jnp.float32)]
        in_specs += [pl.BlockSpec((Cout, K * Cin), lambda n: (0, 0)),
                     pl.BlockSpec((Cout, 1), lambda n: (0, 0))]
    if has_ds:
        operands += [params["wd"].reshape(Cout_last, Cin0).astype(jnp.bfloat16),
                     params["bd"].reshape(Cout_last, 1).astype(jnp.float32)]
        in_specs += [pl.BlockSpec((Cout_last, Cin0), lambda n: (0, 0)),
                     pl.BlockSpec((Cout_last, 1), lambda n: (0, 0))]

    kernel = _build_fused_kernel(layer_metas, has_ds, b_tile, L)
    return pl.pallas_call(
        kernel,
        out_shape=jax.ShapeDtypeStruct((N, Cout_last, L), out_dtype),
        grid_spec=pltpu.PrefetchScalarGridSpec(
            num_scalar_prefetch=0,
            grid=(N // b_tile,),
            in_specs=in_specs,
            out_specs=pl.BlockSpec((b_tile, Cout_last, L), lambda n: (n, 0, 0)),
        ),
        compiler_params=pltpu.CompilerParams(dimension_semantics=("parallel",)),
    )(*operands)


# ---------------------------------------------------------------------------
# Deterministic parameter init (xavier_uniform weights, PyTorch-style bias)
# ---------------------------------------------------------------------------
def make_params(key, conv_channel_sizes, kernel_sizes, dilations):
    sub_blocks = []
    pairs = list(zip(conv_channel_sizes[:-1], conv_channel_sizes[1:]))
    for (cin, cout), k, d in zip(pairs, kernel_sizes, dilations):
        key, kw, kb = jax.random.split(key, 3)
        bound = math.sqrt(6.0 / (cin * k + cout * k))          # xavier_uniform_
        w = jax.random.uniform(kw, (cout, cin, k), jnp.float32, -bound, bound)
        bbound = 1.0 / math.sqrt(cin * k)                      # Conv1d bias init
        b = jax.random.uniform(kb, (cout,), jnp.float32, -bbound, bbound)
        sub_blocks.append({"w": w, "b": b, "dilation": d})
    params = {"sub_blocks": sub_blocks}
    if conv_channel_sizes[0] != conv_channel_sizes[-1]:
        cin, cout = conv_channel_sizes[0], conv_channel_sizes[-1]
        key, kw, kb = jax.random.split(key, 3)
        bound = math.sqrt(6.0 / (cin + cout))
        params["wd"] = jax.random.uniform(kw, (cout, cin, 1), jnp.float32,
                                          -bound, bound)
        bbound = 1.0 / math.sqrt(cin)
        params["bd"] = jax.random.uniform(kb, (cout,), jnp.float32, -bbound, bbound)
    return params


# ---------------------------------------------------------------------------
# Pure-JAX reference (same bf16 matmul quantisation as the kernel)
# ---------------------------------------------------------------------------
def reference_forward(x_ncl, params):
    act = x_ncl.astype(jnp.float32)
    y = None
    for layer in params["sub_blocks"]:
        w = layer["w"]                                 # (Cout, Cin, K)
        b, d = layer["b"], int(layer["dilation"])
        Cout, Cin, K = w.shape
        pad = (K - 1) * d
        L = act.shape[-1]
        xp = jnp.pad(act, ((0, 0), (0, 0), (pad, 0))).astype(jnp.bfloat16)
        w_bf = w.astype(jnp.bfloat16)
        acc = jnp.zeros((act.shape[0], Cout, L), jnp.float32)
        for k in range(K):
            acc = acc + jnp.einsum("oc,ncl->nol", w_bf[:, :, k],
                                   xp[:, :, k * d:k * d + L],
                                   preferred_element_type=jnp.float32)
        y = jnp.maximum(acc + b[None, :, None], 0.0)
        act = y
    if "wd" in params:
        wd = params["wd"].reshape(params["wd"].shape[0], -1).astype(jnp.bfloat16)
        res = jnp.einsum("oc,ncl->nol", wd, x_ncl.astype(jnp.bfloat16),
                         preferred_element_type=jnp.float32)
        res = res + params["bd"][None, :, None]
    else:
        res = x_ncl.astype(jnp.float32)
    return jnp.maximum(y + res, 0.0)


# ---------------------------------------------------------------------------
if __name__ == "__main__":
    # TemporalBlock config: two ConvTemporalSubBlocks, downsample present
    # (first channel size != last).  L is a multiple of 128 so the time axis
    # fills the 128 lanes (lane-dense loads / stores).
    conv_channel_sizes = [4, 8, 16]
    kernel_sizes = [3, 3]
    strides = [1, 1]                                   # DCAN uses stride 1
    dilations = [1, 2]
    paddings = [(k - 1) * d for k, d in zip(kernel_sizes, dilations)]  # causal
    dropouts = [0.2, 0.2]                              # identity at inference

    N, C, L = 2, conv_channel_sizes[0], 128

    key = jax.random.PRNGKey(0)
    key, kx = jax.random.split(key)
    x = jax.random.normal(kx, (N, C, L), jnp.float32)  # PyTorch NCL layout

    params = make_params(key, conv_channel_sizes, kernel_sizes, dilations)

    # Default b_tile = max(1, N // 2) = 1 here -> grid of 2 "parallel" steps
    # (one per v7x TensorCore); each step processes its whole tile with one
    # folded matmul per layer.
    out = jax.block_until_ready(temporal_block_forward(x, params))
    ref = jax.block_until_ready(reference_forward(x, params))

    assert out.shape == (N, conv_channel_sizes[-1], L)
    assert out.dtype == jnp.bfloat16
    assert jnp.allclose(out.astype(jnp.float32), ref, atol=2e-2, rtol=2e-2), \
        "kernel output mismatch vs reference"

    print("KERNEL_OK")
</pallas_src>

<mosaic_0001>
module attributes {stable_mosaic.version = 11 : i64} {
  func.func @kernel(%arg0: i32, %arg1: memref<1x4x128xf32, #tpu.memory_space<vmem>>, %arg2: memref<8x12xbf16, #tpu.memory_space<vmem>>, %arg3: memref<8x1xf32, #tpu.memory_space<vmem>>, %arg4: memref<16x24xbf16, #tpu.memory_space<vmem>>, %arg5: memref<16x1xf32, #tpu.memory_space<vmem>>, %arg6: memref<16x4xbf16, #tpu.memory_space<vmem>>, %arg7: memref<16x1xf32, #tpu.memory_space<vmem>>, %arg8: memref<1x16x128xbf16, #tpu.memory_space<vmem>>) attributes {dimension_semantics = [#tpu.dimension_semantics<parallel>], iteration_bounds = array<i64: 2>, scalar_prefetch = 0 : i64, scratch_operands = 0 : i64, tpu.core_type = #tpu.core_type<tc>, window_params = [{transform_indices = @transform_0, window_bounds = array<i64: 1, 4, 128>}, {pipeline_mode = #tpu.pipeline_mode<synchronous>, transform_indices = @transform_1, window_bounds = array<i64: 8, 12>}, {pipeline_mode = #tpu.pipeline_mode<synchronous>, transform_indices = @transform_2, window_bounds = array<i64: 8, 1>}, {pipeline_mode = #tpu.pipeline_mode<synchronous>, transform_indices = @transform_3, window_bounds = array<i64: 16, 24>}, {pipeline_mode = #tpu.pipeline_mode<synchronous>, transform_indices = @transform_4, window_bounds = array<i64: 16, 1>}, {pipeline_mode = #tpu.pipeline_mode<synchronous>, transform_indices = @transform_5, window_bounds = array<i64: 16, 4>}, {pipeline_mode = #tpu.pipeline_mode<synchronous>, transform_indices = @transform_6, window_bounds = array<i64: 16, 1>}, {transform_indices = @transform_7, window_bounds = array<i64: 1, 16, 128>}]} {
    %c0 = arith.constant 0 : index
    %c0_0 = arith.constant 0 : index
    %c0_1 = arith.constant 0 : index
    %0 = vector.load %arg1[%c0, %c0_0, %c0_1] : memref<1x4x128xf32, #tpu.memory_space<vmem>>, vector<1x4x128xf32>
    %1 = vector.shape_cast %0 : vector<1x4x128xf32> to vector<4x128xf32>
    %2 = tpu.iota {dimensions = array<i32: 1>} : vector<1x128xi32>
    %c2_i32 = arith.constant 2 : i32
    %3 = tpu.dynamic_rotate %1 by %c2_i32 dim 1 : vector<4x128xf32>, i32 -> vector<4x128xf32>
    %c2_i32_2 = arith.constant 2 : i32
    %4 = vector.broadcast %c2_i32_2 : i32 to vector<1x128xi32>
    %5 = arith.cmpi sge, %2, %4 : vector<1x128xi32>
    %cst = arith.constant 0.000000e+00 : f32
    %6 = vector.shape_cast %5 : vector<1x128xi1> to vector<1x128xi1>
    %7 = vector.broadcast %6 : vector<1x128xi1> to vector<4x128xi1>
    %8 = vector.broadcast %cst : f32 to vector<4x128xf32>
    %9 = arith.select %7, %3, %8 : vector<4x128xi1>, vector<4x128xf32>
    %c1_i32 = arith.constant 1 : i32
    %10 = tpu.dynamic_rotate %1 by %c1_i32 dim 1 : vector<4x128xf32>, i32 -> vector<4x128xf32>
    %c1_i32_3 = arith.constant 1 : i32
    %11 = vector.broadcast %c1_i32_3 : i32 to vector<1x128xi32>
    %12 = arith.cmpi sge, %2, %11 : vector<1x128xi32>
    %cst_4 = arith.constant 0.000000e+00 : f32
    %13 = vector.shape_cast %12 : vector<1x128xi1> to vector<1x128xi1>
    %14 = vector.broadcast %13 : vector<1x128xi1> to vector<4x128xi1>
    %15 = vector.broadcast %cst_4 : f32 to vector<4x128xf32>
    %16 = arith.select %14, %10, %15 : vector<4x128xi1>, vector<4x128xf32>
    %17 = tpu.concatenate %9, %16, %1 in 0 : vector<4x128xf32>, vector<4x128xf32>, vector<4x128xf32> -> vector<12x128xf32>
    %c0_5 = arith.constant 0 : index
    %c0_6 = arith.constant 0 : index
    %18 = vector.load %arg2[%c0_5, %c0_6] : memref<8x12xbf16, #tpu.memory_space<vmem>>, vector<8x12xbf16>
    %19 = arith.truncf %17 : vector<12x128xf32> to vector<12x128xbf16>
    %cst_7 = arith.constant dense<0.000000e+00> : vector<8x128xf32>
    %20 = tpu.matmul %18, %19, %cst_7 {dimension_numbers = #tpu.dot_dimension_numbers<[1], [0], [0], [1], [0, 0, 1, 1], [], []>} : vector<8x12xbf16>, vector<12x128xbf16>, vector<8x128xf32> -> vector<8x128xf32>
    %c0_8 = arith.constant 0 : index
    %c0_9 = arith.constant 0 : index
    %21 = vector.load %arg3[%c0_8, %c0_9] : memref<8x1xf32, #tpu.memory_space<vmem>>, vector<8x1xf32>
    %22 = vector.broadcast %21 : vector<8x1xf32> to vector<8x128xf32>
    %23 = arith.addf %20, %22 : vector<8x128xf32>
    %cst_10 = arith.constant 0.000000e+00 : f32
    %24 = vector.broadcast %cst_10 : f32 to vector<8x128xf32>
    %25 = arith.maximumf %23, %24 : vector<8x128xf32>
    %c4_i32 = arith.constant 4 : i32
    %26 = tpu.dynamic_rotate %25 by %c4_i32 dim 1 : vector<8x128xf32>, i32 -> vector<8x128xf32>
    %c4_i32_11 = arith.constant 4 : i32
    %27 = vector.broadcast %c4_i32_11 : i32 to vector<1x128xi32>
    %28 = arith.cmpi sge, %2, %27 : vector<1x128xi32>
    %cst_12 = arith.constant 0.000000e+00 : f32
    %29 = vector.shape_cast %28 : vector<1x128xi1> to vector<1x128xi1>
    %30 = vector.broadcast %29 : vector<1x128xi1> to vector<8x128xi1>
    %31 = vector.broadcast %cst_12 : f32 to vector<8x128xf32>
    %32 = arith.select %30, %26, %31 : vector<8x128xi1>, vector<8x128xf32>
    %c2_i32_13 = arith.constant 2 : i32
    %33 = tpu.dynamic_rotate %25 by %c2_i32_13 dim 1 : vector<8x128xf32>, i32 -> vector<8x128xf32>
    %c2_i32_14 = arith.constant 2 : i32
    %34 = vector.broadcast %c2_i32_14 : i32 to vector<1x128xi32>
    %35 = arith.cmpi sge, %2, %34 : vector<1x128xi32>
    %cst_15 = arith.constant 0.000000e+00 : f32
    %36 = vector.shape_cast %35 : vector<1x128xi1> to vector<1x128xi1>
    %37 = vector.broadcast %36 : vector<1x128xi1> to vector<8x128xi1>
    %38 = vector.broadcast %cst_15 : f32 to vector<8x128xf32>
    %39 = arith.select %37, %33, %38 : vector<8x128xi1>, vector<8x128xf32>
    %40 = tpu.concatenate %32, %39, %25 in 0 : vector<8x128xf32>, vector<8x128xf32>, vector<8x128xf32> -> vector<24x128xf32>
    %c0_16 = arith.constant 0 : index
    %c0_17 = arith.constant 0 : index
    %41 = vector.load %arg4[%c0_16, %c0_17] : memref<16x24xbf16, #tpu.memory_space<vmem>>, vector<16x24xbf16>
    %42 = arith.truncf %40 : vector<24x128xf32> to vector<24x128xbf16>
    %cst_18 = arith.constant dense<0.000000e+00> : vector<16x128xf32>
    %43 = tpu.matmul %41, %42, %cst_18 {dimension_numbers = #tpu.dot_dimension_numbers<[1], [0], [0], [1], [0, 0, 1, 1], [], []>} : vector<16x24xbf16>, vector<24x128xbf16>, vector<16x128xf32> -> vector<16x128xf32>
    %c0_19 = arith.constant 0 : index
    %c0_20 = arith.constant 0 : index
    %44 = vector.load %arg5[%c0_19, %c0_20] : memref<16x1xf32, #tpu.memory_space<vmem>>, vector<16x1xf32>
    %45 = vector.broadcast %44 : vector<16x1xf32> to vector<16x128xf32>
    %46 = arith.addf %43, %45 : vector<16x128xf32>
    %cst_21 = arith.constant 0.000000e+00 : f32
    %47 = vector.broadcast %cst_21 : f32 to vector<16x128xf32>
    %48 = arith.maximumf %46, %47 : vector<16x128xf32>
    %c0_22 = arith.constant 0 : index
    %c0_23 = arith.constant 0 : index
    %49 = vector.load %arg6[%c0_22, %c0_23] : memref<16x4xbf16, #tpu.memory_space<vmem>>, vector<16x4xbf16>
    %50 = arith.truncf %1 : vector<4x128xf32> to vector<4x128xbf16>
    %cst_24 = arith.constant dense<0.000000e+00> : vector<16x128xf32>
    %51 = tpu.matmul %49, %50, %cst_24 {dimension_numbers = #tpu.dot_dimension_numbers<[1], [0], [0], [1], [0, 0, 1, 1], [], []>} : vector<16x4xbf16>, vector<4x128xbf16>, vector<16x128xf32> -> vector<16x128xf32>
    %c0_25 = arith.constant 0 : index
    %c0_26 = arith.constant 0 : index
    %52 = vector.load %arg7[%c0_25, %c0_26] : memref<16x1xf32, #tpu.memory_space<vmem>>, vector<16x1xf32>
    %53 = vector.broadcast %52 : vector<16x1xf32> to vector<16x128xf32>
    %54 = arith.addf %51, %53 : vector<16x128xf32>
    %55 = arith.addf %48, %54 : vector<16x128xf32>
    %cst_27 = arith.constant 0.000000e+00 : f32
    %56 = vector.broadcast %cst_27 : f32 to vector<16x128xf32>
    %57 = arith.maximumf %55, %56 : vector<16x128xf32>
    %58 = arith.truncf %57 : vector<16x128xf32> to vector<16x128xbf16>
    %c0_28 = arith.constant 0 : index
    %c0_29 = arith.constant 0 : index
    %c0_30 = arith.constant 0 : index
    %59 = vector.load %arg8[%c0_28, %c0_29, %c0_30] : memref<1x16x128xbf16, #tpu.memory_space<vmem>>, vector<1x16x128xbf16>
    %60 = vector.shape_cast %59 : vector<1x16x128xbf16> to vector<16x128xbf16>
    %61 = vector.shape_cast %58 : vector<16x128xbf16> to vector<1x16x128xbf16>
    tpu.vector_store %arg8[%c0_28, %c0_29, %c0_30], %61 {strides = array<i32>} : memref<1x16x128xbf16, #tpu.memory_space<vmem>>, vector<1x16x128xbf16>,
    return
  }
  func.func @transform_0(%arg0: i32) -> (i32, i32, i32) {
    %c0_i32 = arith.constant 0 : i32
    %c0_i32_0 = arith.constant 0 : i32
    %c0_i32_1 = arith.constant 0 : i32
    return %arg0, %c0_i32, %c0_i32_0 : i32, i32, i32
  }
  func.func @transform_1(%arg0: i32) -> (i32, i32) {
    %c0_i32 = arith.constant 0 : i32
    %c0_i32_0 = arith.constant 0 : i32
    %c0_i32_1 = arith.constant 0 : i32
    return %c0_i32, %c0_i32_0 : i32, i32
  }
  func.func @transform_2(%arg0: i32) -> (i32, i32) {
    %c0_i32 = arith.constant 0 : i32
    %c0_i32_0 = arith.constant 0 : i32
    %c0_i32_1 = arith.constant 0 : i32
    return %c0_i32, %c0_i32_0 : i32, i32
  }
  func.func @transform_3(%arg0: i32) -> (i32, i32) {
    %c0_i32 = arith.constant 0 : i32
    %c0_i32_0 = arith.constant 0 : i32
    %c0_i32_1 = arith.constant 0 : i32
    return %c0_i32, %c0_i32_0 : i32, i32
  }
  func.func @transform_4(%arg0: i32) -> (i32, i32) {
    %c0_i32 = arith.constant 0 : i32
    %c0_i32_0 = arith.constant 0 : i32
    %c0_i32_1 = arith.constant 0 : i32
    return %c0_i32, %c0_i32_0 : i32, i32
  }
  func.func @transform_5(%arg0: i32) -> (i32, i32) {
    %c0_i32 = arith.constant 0 : i32
    %c0_i32_0 = arith.constant 0 : i32
    %c0_i32_1 = arith.constant 0 : i32
    return %c0_i32, %c0_i32_0 : i32, i32
  }
  func.func @transform_6(%arg0: i32) -> (i32, i32) {
    %c0_i32 = arith.constant 0 : i32
    %c0_i32_0 = arith.constant 0 : i32
    %c0_i32_1 = arith.constant 0 : i32
    return %c0_i32, %c0_i32_0 : i32, i32
  }
  func.func @transform_7(%arg0: i32) -> (i32, i32, i32) {
    %c0_i32 = arith.constant 0 : i32
    %c0_i32_0 = arith.constant 0 : i32
    %c0_i32_1 = arith.constant 0 : i32
    return %arg0, %c0_i32, %c0_i32_0 : i32, i32, i32
  }
}

</mosaic_0001>

<bundles_post_ra>
// kernel: tpu_custom_call.1
= control target key start
LH: loop header
LB: loop body
LE: loop exit
PB: predicated region body
PF: predicated region fallthrough
CT: control target
= control target key end

     0   :  { %12 = vsyncpa [#allocation3], 0  ;;  %s954_s0 = inlined_call_operand.vmem [shape: f32[2,4,128], index: 0, kind: input, shape index: {}]   ;;  %s955_s1 = inlined_call_operand.vmem [shape: bf16[8,12], index: 1, kind: input, shape index: {}]   ;;  %s956_s2 = inlined_call_operand.vmem [shape: f32[8,1], index: 2, kind: input, shape index: {}]   ;;  %s957_s3 = inlined_call_operand.vmem [shape: bf16[16,24], index: 3, kind: input, shape index: {}]   ;;  %s958_s4 = inlined_call_operand.vmem [shape: f32[16,1], index: 4, kind: input, shape index: {}]   ;;  %s959_s5 = inlined_call_operand.vmem [shape: bf16[16,4], index: 5, kind: input, shape index: {}]   ;;  %s960_s6 = inlined_call_operand.vmem [shape: f32[16,1], index: 6, kind: input, shape index: {}]   ;;  %s961_s7 = inlined_call_operand.hbm [shape: bf16[2,16,128], index: 7, kind: output, shape index: {}]  }
   0x1   :  { %14 = vsyncpa [#allocation3 + $0x1], 0  ;;  %s809_s24 = smov 0   ;;  %s811_s25 = smov 0  }
   0x2   :  { %s813_s26 = smov 0   ;;  %s815_s27 = smov 0  }
   0x3 LB: > { %s830_s28 = sadd.s32 4294967295, %s759_s27   ;;  %s591_s29 = sadd.s32 4294967294, %s759_s27   ;;  %s759_s27 = sphi %s815_s27, %s967_s27   ;;  %s755_s26 = sphi %s813_s26, %s966_s26   ;;  %s751_s25 = sphi %s811_s25, %s965_s25   ;;  %s747_s24 = sphi %s809_s24, %s964_s24  }
   0x4   : > { %s834_s30 = sadd.s32 1, %s759_s27   ;;  %s179_s8 = sadd.s32 1, %s755_s26 }
   0x5   : > { %s176_s9 = ssub.s32 %s759_s27, %s834_s30  ;;  %p189_p0 = scmp.ne.s32.totalorder %s755_s26, %s751_s25 }
   0x6   : > { %p177_p1 = scmp.eq.s32.totalorder %s176_s9, 0  ;;  %p190_p2 = scmp.eq.s32.totalorder %s830_s28, 1 }
   0x7   : > { %p195_p3 = scmp.ne.s32.totalorder %s751_s25, %s747_s24  ;;  %p196_p4 = scmp.eq.s32.totalorder %s591_s29, 1 }
   0x8   : > { %s845_s10 = scalar_select %p177_p1, %s755_s26, %s179_s8  }
   0x9   : > { %p847_p5 = por %p190_p2, %p189_p0  ;;  %p851_p6 = por %p196_p4, %p195_p3 }
   0xa   : > { %p594_p7 = scmp.ge.s32.totalorder %s759_s27, 1  ;;  %p239_p8 = scmp.lt.s32.totalorder %s759_s27, 3 }
   0xc   : > { %p240_p9 = pnand %p594_p7, %p239_p8 }
   0xd   : > { %p270_p10 = scmp.lt.s32.totalorder (!%p240_p9), %s830_s28, 1  ;;  %v761_v0 = vmov (!%p240_p9), 0.0   ;;  %vm762_vm0 = vmmov (!%p240_p9), 0   ;;  %v297_v2 = vld [vmem:[%s956_s2] sm:$0xff] (!%p240_p9)  ;;  %s763_s20 = smov (!%p240_p9), 1   ;;  %v764_v3 = vmov (!%p240_p9), 0   ;;  %v276_v4 = vlaneseq (!%p240_p9) }
   0xe   : > { %243 = sbr.rel (%p240_p9) target bundleno = 732 (0x2dc), region = 48  ;;  %627 = vmatprep.subr.bf16.mxu0 (!%p240_p9), %v761_v0  ;;  %633 = vmatprep.subr.bf16.mxu1 (!%p240_p9), %v761_v0  ;;  %s765_s21 = smov (!%p240_p9), 2   ;;  %vm293_vm3 = vcmask (!%p240_p9), 1043456   ;;  %vm307_vm4 = vcmask (!%p240_p9), 1045504   ;;  %vm456_vm5 = vcmask (!%p240_p9), 1041408   ;;  %vm303_vm6 = vcmask (!%p240_p9), 97280  }
   0xf   : > { %629 = vmatprep.mubr.msk.bf16.mxu0 (!%p240_p9), %vm762_vm0, %v761_v0  ;;  %637 = vmatprep.mubr.msk.bf16.mxu1 (!%p240_p9), %vm762_vm0, %v761_v0  ;;  %v277_v5 = vand.u32 (!%p240_p9), 127, %v276_v4  ;;  %v295_v15 = vld [vmem:[%s955_s1] sm:$0xf] (!%p240_p9)  ;;  %vm452_vm7 = vcmask (!%p240_p9), 31744   ;;  %s766_s9 = smov (!%p240_p9), 4   ;;  %v436_v29 = vld [vmem:[%s960_s6 + $0x8] sm:$0xff] (!%p240_p9) }
  0x10   : > { %693 = vset.pattern.permute.xlu1 (!%p240_p9), %v764_v3  ;;  %694 = vset.pattern.permute.xlu0 (!%p240_p9), %v764_v3  ;;  %v695_v17 = vld [vmem:[%s959_s5] sm:$0xff] (!%p240_p9)   ;;  %v366_v31 = vld [vmem:[%s958_s4 + $0x8] sm:$0xff] (!%p240_p9)  ;;  %vm382_vm10 = vcmask (!%p240_p9), 195584   ;;  %s267_s23 = sand.u32 (!%p240_p9), 1, %s751_s25   ;;  %s614_s8 = sshll.u32 (!%p240_p9), %s830_s28, 7 }
  0x11   : > { %300 = vperm.xlu1 (!%p240_p9), %693, %v297_v2   ;;  %vm286_vm1 = vcmp.ge.s32.totalorder (!%p240_p9), %v277_v5, 1  ;;  %vm280_vm2 = vcmp.ge.s32.totalorder (!%p240_p9), %v277_v5, 2  ;;  %v365_v25 = vld [vmem:[%s958_s4] sm:$0xff] (!%p240_p9)  ;;  %vm354_vm8 = vcmp.ge.s32.totalorder (!%p240_p9), %v277_v5, 4  ;;  %s595_s29 = sshll.u32 (!%p240_p9), %s267_s23, 3  ;;  %s912_s18 = scalar_lea.sflag (!%p240_p9), [#allocation3], %s267_s23 }
  0x12   : > { %v435_v26 = vld [vmem:[%s960_s6] sm:$0xff] (!%p240_p9)  ;;  %vm599_vm9 = vmpackc.low (!%p240_p9), %vm280_vm2, %vm354_vm8 }
  0x13   : > { %v696_v38 = vld [vmem:[%s957_s3] sm:$0xff] (!%p240_p9)  }
  0x15   : > { %s271_s13 = scalar_select %p270_p10, %s830_s28, 1 }
  0x16   : > { %s767_s28 = smov [#allocation2]  }
  0x17   : > { %s596_s14 = sshll.u32 %s271_s13, 2  ;;  %s269_s13 = scalar_lea.vmem [#allocation2], %s595_s29 }
  0x18   : > { %s273_s17 = scalar_lea.vmem %s954_s0, %s596_s14  ;;  %s529_s14 = sshll.u32 %s269_s13, 4  ;;  %s910_s14 = int_to_ptr.vmem [resolvable:$true] %s529_s14 }
  0x19   : > { %v275_v1 = vld [vmem:[%s273_s17] sm:$0xf]  ;;  %s908_s17 = scalar_lea.hbm %s961_s7, %s614_s8  ;;  %s697_s19 = scalar_lea.vmem %s910_s14, 128 }
  0x1a   : > { %284 = vrot.lane.b32.xlu0 %v275_v1, %s763_s20  ;;  %v434_v13 = vpack.c.bf16 %v275_v1, %v275_v1  ;;  %p698_p11 = scmp.ne.s32.totalorder %s910_s14, %s697_s19  ;;  %s701_s20 = sshll.u32 %s767_s28, 4  ;;  %s702_s20 = int_to_ptr.vmem [resolvable:$false] %s701_s20 }
  0x1b   : > { %p704_p0 = scmp.lt.s32.totalorder %s910_s14, %s702_s20 }
  0x1c   : > { %v458_v16 = vsel %vm456_vm5, %v434_v13, 0  ;;  %p699_p12 = pnand %p698_p11, %p847_p5 }
  0x1e   : > { %278 = vrot.lane.b32.xlu0 %v275_v1, %s765_s21  ;;  %p700_p13 = pneg %p699_p12 }
  0x8c   : > { %v285_v6 = vpop.permute.xlu0 %284 }
  0x8d   : > { %v289_v7 = vsel %vm286_vm1, %v285_v6, 0.0 }
  0x8e   : > { %v291_v8 = vrot.slane %v289_v7, 4 }
  0x90   : > { %v279_v9 = vpop.permute.xlu0 %278  ;;  %v301_v18 = vpop.permute.xlu1 %300 }
  0x91   : > { %v283_v10 = vsel %vm280_vm2, %v279_v9, 0.0 }
  0x92   : > { %v294_v11 = vsel %vm293_vm3, %v283_v10, %v291_v8 }
  0x93   : > { %v296_v12 = vpack.c.bf16 %v275_v1, %v294_v11 }
  0x95   : > { %v309_v14 = vsel %vm307_vm4, %v296_v12, 0 }
  0x96   : > { %628 = vmatpush3.bf16.msra.mxu0 %v309_v14 }
  0x97   : > { %641 = vmatprep.subr.bf16.mxu0 %v761_v0 }
  0x99   : > { %630 = vmatmul.mubr.msk.bf16.vlgmr.msra.gmra.mrb[0].mxu0 %vm303_vm6, %v295_v15 }
  0x9a   : > { %642 = vmatpush3.bf16.msra.mxu0 %v458_v16  ;;  %643 = vmatprep.mubr.msk.bf16.mxu0 %vm762_vm0, %v761_v0 }
  0xa1   : > { %644 = vmatmul.mubr.msk.bf16.vlgmr.msra.gmra.mrb[4].mxu0 %vm452_vm7, %v695_v17 }
 0x16c   : > { %v345_v19 = vpop.f32.mrb[0].mxu0 }
 0x16d   : > { %v346_v20 = vadd.f32 %v345_v19, %v301_v18  ;;  %v631_v21 = vpop.f32.mrb[1].mxu0 }
 0x16e   : > { %v348_v22 = vpop.f32.mrb[2].mxu0 }
 0x16f   : > { %v351_v23 = vmax.f32 %v346_v20, 0.0  ;;  %v632_v24 = vpop.f32.mrb[3].mxu0 }
 0x171   : > { %358 = vrot.lane.b32.xlu0 %v351_v23, %s765_s21  ;;  %352 = vrot.lane.b32.xlu1 %v351_v23, %s766_s9  ;;  %v364_v36 = vpack.c.bf16 %v351_v23, %v351_v23  ;;  %s703_s21 = scalar_lea.vmem %s702_s20, 256 }
 0x172   : > { %p705_p1 = scmp.lt.s32.totalorder %s703_s21, %s697_s19 }
 0x173   : > { %v387_v37 = vsel %vm293_vm3, %v364_v36, 0 }
 0x174   : > { %v494_v27 = vpop.f32.mrb[4].mxu0  ;;  %p706_p2 = por %p705_p1, %p704_p0 }
 0x175   : > { %369 = vperm.xlu1 %693, %v365_v25   ;;  %v645_v28 = vpop.f32.mrb[5].mxu0  ;;  %374 = vperm.xlu0 %694, %v366_v31  }
 0x176   : > { %v497_v30 = vpop.f32.mrb[6].mxu0  ;;  %p707_p3 = pnand %p706_p2, %p700_p13 }
 0x177   : > { %v646_v32 = vpop.f32.mrb[7].mxu0 }
 0x179   : > { %439 = vperm.xlu1 %693, %v435_v26  }
 0x17d   : > { %444 = vperm.xlu1 %693, %v436_v29  }
 0x1e3   : > { %v359_v33 = vpop.permute.xlu0 %358  ;;  %v353_v34 = vpop.permute.xlu1 %352 }
 0x1e4   : > { %v600_v35 = vpack.c.bf16 %v359_v33, %v353_v34 }
 0x1e6   : > { %634 = vmatpush3.bf16.msk.msra.mxu1 %vm599_vm9, %v600_v35 }
 0x1e7   : > { %635 = vmatprep.subr.bf16.mxu1 %v761_v0 }
 0x1ea   : > { %636 = vmatpush3.bf16.msra.mxu1 %v387_v37 }
 0x1ed   : > { %638 = vmatmul.mubr.msk.bf16.vlgmr.msra.gmra.mrb[0].mxu1 %vm382_vm10, %v696_v38 }
 0x1f4   : > { %v370_v39 = vpop.permute.xlu1 %369  ;;  %v375_v42 = vpop.permute.xlu0 %374 }
 0x1f8   : > { %v440_v40 = vpop.permute.xlu1 %439 }
 0x1f9   : > { %v495_v47 = vadd.f32 %v494_v27, %v440_v40 }
 0x1fc   : > { %v445_v45 = vpop.permute.xlu1 %444 }
 0x1fd   : > { %v498_v51 = vadd.f32 %v497_v30, %v445_v45 }
 0x2c0   : > { %v423_v41 = vpop.f32.mrb[0].mxu1 }
 0x2c1   : > { %v424_v43 = vadd.f32 %v423_v41, %v370_v39  ;;  %v639_v44 = vpop.f32.mrb[1].mxu1 }
 0x2c2   : > { %v426_v46 = vpop.f32.mrb[2].mxu1 }
 0x2c3   : > { %v430_v48 = vmax.f32 %v424_v43, 0.0  ;;  %v427_v49 = vadd.f32 %v426_v46, %v375_v42  ;;  %v640_v50 = vpop.f32.mrb[3].mxu1 }
 0x2c5   : > { %v501_v52 = vadd.f32 %v495_v47, %v430_v48  ;;  %v431_v53 = vmax.f32 %v427_v49, 0.0 }
 0x2c7   : > { %v502_v54 = vadd.f32 %v498_v51, %v431_v53  ;;  %v503_v55 = vmax.f32 %v501_v52, 0.0 }
 0x2c9   : > { %v504_v56 = vmax.f32 %v502_v54, 0.0 }
 0x2cb   : > { %v618_v57 = vpack.c.bf16 %v504_v56, %v503_v55 }
 0x2cd   : > { %619 = vst [vmem:[%s269_s13] sm:$0xff] %v618_v57  }
 0x2ce   : > { %710 = shalt.err (!%p707_p3)
}
 0x2cf   : > { %s711_s22 = scalar_lea.hbm %s908_s17, 128  ;;  %s715_s8 = scalar_lea.hbm %s961_s7, 256 }
 0x2d0   : > { %p712_p4 = scmp.ne.s32.totalorder %s908_s17, %s711_s22  ;;  %p716_p9 = scmp.lt.u32.totalorder %s908_s17, %s961_s7 }
 0x2d1   : > { %p717_p10 = scmp.lt.u32.totalorder %s715_s8, %s711_s22  ;;  %p719_p12 = scmp.lt.u32.totalorder %s711_s22, %s908_s17 }
 0x2d2   : > { %p713_p7 = pnand %p712_p4, %p847_p5 }
 0x2d3   : > { %p718_p11 = por %p717_p10, %p716_p9 }
 0x2d4   : > { %p714_p8 = pneg %p713_p7 }
 0x2d5   : > { %p720_p13 = por %p719_p12, %p718_p11 }
 0x2d7   : > { %p721_p0 = pnand %p720_p13, %p714_p8 }
 0x2d9   : > { %724 = shalt.err (!%p721_p0)
}
 0x2da   : > { %s768_s16 = smov 64  }
 0x2db   : > { %647 = dma.vmem_to_hbm [thread:$0]  (%p847_p5), %s910_s14, 128, %s908_s17, %s912_s18, %s768_s16, %s768_s16, %s766_s9  }
 0x2dc PF: > { %p653_p1 = scmp.ge.s32.totalorder %s759_s27, 2  ;;  %s544_s19 = sand.u32 1, %s747_s24  }
 0x2dd   : > { %s545_s28 = scalar_lea.sflag [#allocation3], %s544_s19 }
 0x2de   : > { %p650_p2 = pnand %p653_p1, %p851_p6 }
 0x2e0   : > { %742 = dma.done.wait (!%p650_p2), %s545_s28, 128  }
 0x2e1   : > { %744 = vsyncadd (!%p650_p2), %s545_s28, 4294967168  ;;  %p17_p3 = scmp.ge.s32.totalorder %s834_s30, 4   ;;  %s964_s24 = smov %s751_s25 }
 0x2e2   : > { %s965_s25 = smov %s755_s26  ;;  %s966_s26 = smov %s845_s10 }
 0x2e3   : > { %s967_s27 = smov %s834_s30  ;;  %19 = sbr.rel (!%p17_p3) target bundleno = 3 (0x3), region = 83 }
 0x2ea   :  { %550 = vsyncpa [#allocation3], 1 }
 0x2eb   :  { %552 = vsyncpa [#allocation3 + $0x1], 1 }

</bundles_post_ra>
